<compile_context>
chip_gen: v7x
topology: tpu7x:2x2x1
jax: 0.10.0
libtpu: 0.0.40
codegen_flags: <defaults>
</compile_context>

<pallas_src>
import numpy as np
import jax
import jax.numpy as jnp
from jax.experimental import pallas as pl
from jax.experimental.pallas import tpu as pltpu


def _cdiv(a: int, b: int) -> int:
    return (a + b - 1) // b


def _round_up(a: int, b: int) -> int:
    return _cdiv(a, b) * b


# ---------------------------------------------------------------------------
# Kernels
# ---------------------------------------------------------------------------

def _sinusoidal_kernel_wide(x_ref, w_ref, phase_ref, out_ref):
    # x_ref:     (TB, 1)      f32  time steps (column)
    # w_ref:     (1, 2*half)  f32  [W, W] * 2*pi   (folded once at init)
    # phase_ref: (1, 2*half)  f32  [0..0, pi/2..pi/2]
    # out_ref:   (TB, 2*half) -> single sin, single full-width store.
    proj = x_ref[...] * w_ref[...] + phase_ref[...]     # VPU broadcast (no MXU; K=1)
    out_ref[...] = jnp.sin(proj).astype(out_ref.dtype)  # EUP


def _sinusoidal_kernel_packed(x_ref, e_ref, phase_ref, out_ref):
    # x_ref:     (TB, G)          f32  G batch rows packed per output row
    # e_ref:     (G, G*2*half)    f32  block-diagonal, blocks = [W, W]*2*pi
    # phase_ref: (1, G*2*half)    f32  tile([0..0, pi/2..pi/2], G)
    # out_ref:   (TB, G*2*half)   lane-dense (>= up to 128 lanes) output rows.
    proj = jnp.dot(x_ref[...], e_ref[...],
                   preferred_element_type=jnp.float32)   # tiny-K MXU lane expansion
    out_ref[...] = jnp.sin(proj + phase_ref[...]).astype(out_ref.dtype)


# ---------------------------------------------------------------------------
# Parameter preparation (done ONCE; W is fixed / non-trainable)
# ---------------------------------------------------------------------------

def prepare_sinusoidal_params(W):
    """Precompute all kernel-side constants from the fixed weight vector W."""
    W = jnp.asarray(W, dtype=jnp.float32)
    half = W.shape[0]
    two_h = 2 * half
    w_cat = jnp.concatenate([W, W]) * jnp.float32(2.0 * np.pi)          # (2h,)
    phase = jnp.concatenate([jnp.zeros((half,), jnp.float32),
                             jnp.full((half,), np.pi / 2, jnp.float32)])  # (2h,)

    if two_h >= 128:
        G = 1
        w_arg = w_cat.reshape(1, two_h)                                  # (1, 2h)
    else:
        # Pack G batch rows per output row to fill the 128-lane vreg.
        G = max(1, 128 // two_h)
        eye = jnp.eye(G, dtype=jnp.float32)                              # (G, G)
        # E[g, g*2h + j] = w_cat[j]; zero elsewhere (block diagonal).
        w_arg = (eye[:, :, None] * w_cat[None, None, :]).reshape(G, G * two_h)

    phase_row = jnp.tile(phase, G).reshape(1, G * two_h)
    return {"G": G, "half": half, "w": w_arg, "phase": phase_row}


def init_sinusoidal_weights(key, embed_dim: int, scale: float = 30.0):
    """W matches torch.randn(embed_dim//2)*scale (non-trainable); params are the
    precomputed kernel constants."""
    W = jax.random.normal(key, (embed_dim // 2,), dtype=jnp.float32) * scale
    return W, prepare_sinusoidal_params(W)


# ---------------------------------------------------------------------------
# Wrapper
# ---------------------------------------------------------------------------

def sinusoidal_embedding(x, params, *, out_dtype=jnp.float32,
                         target_tile_bytes: int = 1 << 20):
    """x: (B,) float time steps. Returns (B, 2*half) embedding [sin | cos]."""
    B = x.shape[0]
    G = params["G"]
    half = params["half"]
    two_h = 2 * half
    w_out = G * two_h                      # packed output row width (lanes)
    bytes_per_row = w_out * 4

    # Packed-row count, padded only to a multiple of 8 (sublane), NOT a full tile.
    rows = max(1, _cdiv(B, G))
    rows8 = _round_up(rows, 8)

    # Tile rows: ~target_tile_bytes of output per grid step, capped so one output
    # buffer stays <= 8 MiB (double-buffered 16 MiB fits v7x's 32 MiB scoped VMEM).
    tgt_rows = _round_up(_cdiv(target_tile_bytes, bytes_per_row), 8)
    max_rows = max(8, ((8 << 20) // bytes_per_row) // 8 * 8)
    tb = max(8, min(tgt_rows, max_rows, rows8))
    # Ensure >= 2 tiles for v7x megacore once the output is big enough to matter.
    if rows8 * bytes_per_row >= (1 << 20):
        tb = min(tb, _round_up(_cdiv(rows8, 2), 8))

    n_tiles = _cdiv(rows8, tb)
    tb = _round_up(_cdiv(rows8, n_tiles), 8)   # balance tiles; over-pad <= 8*n rows
    rows_pad = n_tiles * tb

    # Pack x into (rows_pad, G); padded entries are 0 -> sin(0)=0 / cos(0)=1, sliced off.
    xf = x.astype(jnp.float32).reshape(-1)
    pad = rows_pad * G - B
    if pad:
        xf = jnp.pad(xf, (0, pad))
    xp = xf.reshape(rows_pad, G)

    kernel = _sinusoidal_kernel_wide if G == 1 else _sinusoidal_kernel_packed
    w_arg = params["w"]

    out = pl.pallas_call(
        kernel,
        out_shape=jax.ShapeDtypeStruct((rows_pad, w_out), out_dtype),
        grid=(n_tiles,),
        in_specs=[
            pl.BlockSpec((tb, G), lambda i: (i, 0)),                 # packed x rows
            pl.BlockSpec(w_arg.shape, lambda i: (0, 0)),             # weights (resident)
            pl.BlockSpec((1, w_out), lambda i: (0, 0)),              # phase (resident)
        ],
        out_specs=pl.BlockSpec((tb, w_out), lambda i: (i, 0)),
        compiler_params=pltpu.CompilerParams(
            dimension_semantics=("parallel",)),                      # shard tiles over TCs
    )(xp, w_arg, params["phase"])

    # (rows_pad, G*2h) row-major is identical memory to (rows_pad*G, 2h): free reshape.
    out = out.reshape(rows_pad * G, two_h)
    if rows_pad * G != B:
        out = out[:B]
    return out


def reference(x, W):
    # Exact PyTorch formula: x[:, None] * W[None, :] * 2*pi, then cat(sin, cos).
    x_proj = x[:, None] * W[None, :] * 2.0 * np.pi
    return jnp.concatenate([jnp.sin(x_proj), jnp.cos(x_proj)], axis=-1)


if __name__ == "__main__":
    key = jax.random.PRNGKey(0)
    k_w, k_x, k_w2, k_x2 = jax.random.split(key, 4)

    # --- Case 1: small embed_dim (packed path, G=4), batch=8 -----------------
    embed_dim, scale, batch = 32, 30.0, 8
    W, params = init_sinusoidal_weights(k_w, embed_dim, scale)
    x = jax.random.uniform(k_x, (batch,), dtype=jnp.float32)   # diffusion-like t in (0,1)
    out = jax.block_until_ready(sinusoidal_embedding(x, params))
    assert out.shape == (batch, embed_dim), out.shape
    np.testing.assert_allclose(np.asarray(out), np.asarray(reference(x, W)),
                               rtol=1e-5, atol=5e-4)

    # --- Case 2: batch not a multiple of G or 8 (pad/slice path) -------------
    x_b = jax.random.uniform(jax.random.PRNGKey(1), (21,), dtype=jnp.float32)
    out_b = jax.block_until_ready(sinusoidal_embedding(x_b, params))
    assert out_b.shape == (21, embed_dim)
    np.testing.assert_allclose(np.asarray(out_b), np.asarray(reference(x_b, W)),
                               rtol=1e-5, atol=5e-4)

    # --- Case 3: wide embed_dim (>=128 lanes, no packing), batch=16 ----------
    embed_dim2, batch2 = 256, 16
    W2, params2 = init_sinusoidal_weights(k_w2, embed_dim2, scale)
    x2 = jax.random.uniform(k_x2, (batch2,), dtype=jnp.float32)
    out2 = jax.block_until_ready(sinusoidal_embedding(x2, params2))
    assert out2.shape == (batch2, embed_dim2)
    np.testing.assert_allclose(np.asarray(out2), np.asarray(reference(x2, W2)),
                               rtol=1e-5, atol=5e-4)

    print("KERNEL_OK")
</pallas_src>

<mosaic_0001>
module attributes {stable_mosaic.version = 11 : i64} {
  func.func @_sinusoidal_kernel_packed(%arg0: i32, %arg1: memref<8x4xf32, #tpu.memory_space<vmem>>, %arg2: memref<4x128xf32, #tpu.memory_space<vmem>>, %arg3: memref<1x128xf32, #tpu.memory_space<vmem>>, %arg4: memref<8x128xf32, #tpu.memory_space<vmem>>) attributes {dimension_semantics = [#tpu.dimension_semantics<parallel>], iteration_bounds = array<i64: 1>, scalar_prefetch = 0 : i64, scratch_operands = 0 : i64, tpu.core_type = #tpu.core_type<tc>, window_params = [{transform_indices = @transform_0, window_bounds = array<i64: 8, 4>}, {pipeline_mode = #tpu.pipeline_mode<synchronous>, transform_indices = @transform_1, window_bounds = array<i64: 4, 128>}, {pipeline_mode = #tpu.pipeline_mode<synchronous>, transform_indices = @transform_2, window_bounds = array<i64: 1, 128>}, {transform_indices = @transform_3, window_bounds = array<i64: 8, 128>}]} {
    %c0 = arith.constant 0 : index
    %c0_0 = arith.constant 0 : index
    %0 = vector.load %arg1[%c0, %c0_0] : memref<8x4xf32, #tpu.memory_space<vmem>>, vector<8x4xf32>
    %c0_1 = arith.constant 0 : index
    %c0_2 = arith.constant 0 : index
    %1 = vector.load %arg2[%c0_1, %c0_2] : memref<4x128xf32, #tpu.memory_space<vmem>>, vector<4x128xf32>
    %cst = arith.constant dense<0.000000e+00> : vector<8x128xf32>
    %2 = tpu.matmul %0, %1, %cst {dimension_numbers = #tpu.dot_dimension_numbers<[1], [0], [0], [1], [0, 0, 1, 1], [], []>} : vector<8x4xf32>, vector<4x128xf32>, vector<8x128xf32> -> vector<8x128xf32>
    %c0_3 = arith.constant 0 : index
    %c0_4 = arith.constant 0 : index
    %3 = vector.load %arg3[%c0_3, %c0_4] : memref<1x128xf32, #tpu.memory_space<vmem>>, vector<1x128xf32>
    %4 = vector.broadcast %3 : vector<1x128xf32> to vector<8x128xf32>
    %5 = arith.addf %2, %4 : vector<8x128xf32>
    %6 = math.sin %5 : vector<8x128xf32>
    %c0_5 = arith.constant 0 : index
    %c0_6 = arith.constant 0 : index
    %7 = vector.load %arg4[%c0_5, %c0_6] : memref<8x128xf32, #tpu.memory_space<vmem>>, vector<8x128xf32>
    tpu.vector_store %arg4[%c0_5, %c0_6], %6 {strides = array<i32>} : memref<8x128xf32, #tpu.memory_space<vmem>>, vector<8x128xf32>,
    return
  }
  func.func @transform_0(%arg0: i32) -> (i32, i32) {
    %c0_i32 = arith.constant 0 : i32
    %c0_i32_0 = arith.constant 0 : i32
    return %arg0, %c0_i32 : i32, i32
  }
  func.func @transform_1(%arg0: i32) -> (i32, i32) {
    %c0_i32 = arith.constant 0 : i32
    %c0_i32_0 = arith.constant 0 : i32
    %c0_i32_1 = arith.constant 0 : i32
    return %c0_i32, %c0_i32_0 : i32, i32
  }
  func.func @transform_2(%arg0: i32) -> (i32, i32) {
    %c0_i32 = arith.constant 0 : i32
    %c0_i32_0 = arith.constant 0 : i32
    %c0_i32_1 = arith.constant 0 : i32
    return %c0_i32, %c0_i32_0 : i32, i32
  }
  func.func @transform_3(%arg0: i32) -> (i32, i32) {
    %c0_i32 = arith.constant 0 : i32
    %c0_i32_0 = arith.constant 0 : i32
    return %arg0, %c0_i32 : i32, i32
  }
}

</mosaic_0001>

<bundles_post_ra>
// kernel: tpu_custom_call.1
= control target key start
LH: loop header
LB: loop body
LE: loop exit
PB: predicated region body
PF: predicated region fallthrough
CT: control target
= control target key end

     0   :  { %vm28_vm0 = vcmask 1043456   ;;  %v276_v2 = vmov 0.0   ;;  %vm277_vm1 = vmmov 0   ;;  %vm24_vm2 = vcmask 31744   ;;  %s347_s0 = inlined_call_operand.vmem [shape: f32[8,4], index: 0, kind: input, shape index: {}]   ;;  %s348_s1 = inlined_call_operand.vmem [shape: f32[4,128], index: 1, kind: input, shape index: {}]   ;;  %s349_s2 = inlined_call_operand.vmem [shape: f32[1,128], index: 2, kind: input, shape index: {}]   ;;  %s350_s3 = inlined_call_operand.hbm [shape: f32[8,128], index: 3, kind: output, shape index: {}]  }
   0x1   :  { %v16_v0 = vld [vmem:[%s348_s1] sm:$0xf]  ;;  %230 = vmatprep.subr.mxu0 %v276_v2  ;;  %232 = vmatprep.mubr.msk.f32.mxu0 %vm277_vm1, %v276_v2 }
   0x2   :  { %v15_v1 = vld [vmem:[%s347_s0] sm:$0xff] }
   0x3   :  { %8 = vsyncpa [#allocation3], 0  ;;  %231 = vmatpush3.msk.msra.mxu0 %vm28_vm0, %v16_v0  ;;  %v221_v3 = vld [vmem:[%s349_s2] ss:$0 sm:$0xff]  ;;  %v278_v17 = vmov 683565275  }
   0x4   :  { %233 = vmatmul.mubr.msk.f32.vlgmr.msra.gmra.mrb[0].mxu0 %vm24_vm2, %v15_v1  ;;  %v279_v19 = vmov 2475754826   ;;  %v280_v22 = vmov 2131351028   ;;  %v281_v25 = vmov 2102212464  }
   0x5   :  { %v282_v28 = vmov 920167782   ;;  %v283_v31 = vmov 1326507024   ;;  %s284_s0 = smov [#allocation2]  }
   0x6   :  { %s213_s1 = sshll.u32 %s284_s0, 4  ;;  %s214_s1 = int_to_ptr.vmem [resolvable:$true] %s213_s1 }
   0x7   :  { %s252_s2 = scalar_lea.vmem %s214_s1, 128  ;;  %p257_p1 = scmp.lt.s32.totalorder %s214_s1, %s214_s1 }
   0x8   :  { %p253_p0 = scmp.ne.s32.totalorder %s214_s1, %s252_s2  ;;  %p258_p2 = scmp.lt.s32.totalorder %s252_s2, %s252_s2 }
   0xa   :  { %p259_p3 = por %p258_p2, %p257_p1 }
   0xc   :  { %p260_p4 = pnand %p259_p3, %p253_p0 }
  0xd7   :  { %v98_v4 = vpop.f32.mrb[0].mxu0 }
  0xd8   :  { %v314_v5 = vadd.f32 %v221_v3, %v98_v4  ;;  %v234_v6 = vpop.f32.mrb[1].mxu0 }
  0xda   :  { %v105_v7 = vand.u32 2139095040, %v314_v5  ;;  %v102_v11 = vand.u32 2147483647, %v314_v5  ;;  %vm104_vm10 = vcmp.lt.s32.totalorder %v314_v5, 0  ;;  %vm194_vm15 = vweird.f32 %v314_v5 }
  0xdc   :  { %v106_v8 = vshrl.u32 %v105_v7, 23  ;;  %v109_v14 = vand.u32 8388607, %v102_v11  ;;  %vm103_vm11 = vcmp.le.f32.partialorder %v102_v11, 0.7853982 }
  0xde   :  { %v224_v9 = vadd.s32 4294967169, %v106_v8  ;;  %v110_v33 = vor.u32 8388608, %v109_v14 }
  0xe0   :  { %v112_v10 = vadd.s32 1, %v224_v9  ;;  %v150_v47 = vshll.u32 %v110_v33, 8 }
  0xe2   :  { %vm113_vm3 = vcmp.gt.s32.totalorder %v112_v10, 0 }
  0xe3   :  { %v114_v12 = vsel %vm113_vm3, %v112_v10, 0 }
  0xe4   :  { %v116_v13 = vand.u32 31, %v114_v12  ;;  %v115_v16 = vshrl.u32 %v114_v12, 5 }
  0xe6   :  { %v117_v15 = vsub.s32 32, %v116_v13  ;;  %v119_v18 = vshll.u32 %v278_v17, %v116_v13  ;;  %v122_v20 = vshll.u32 %v279_v19, %v116_v13  ;;  %v125_v24 = vshll.u32 %v280_v22, %v116_v13 }
  0xe7   :  { %v128_v27 = vshll.u32 %v281_v25, %v116_v13  ;;  %v131_v30 = vshll.u32 %v282_v28, %v116_v13  ;;  %vm134_vm4 = vcmp.lt.s32.totalorder %v115_v16, 1  ;;  %vm137_vm5 = vcmp.lt.s32.totalorder %v115_v16, 4 }
  0xe8   :  { %v120_v21 = vshrl.u32 %v279_v19, %v117_v15  ;;  %v123_v23 = vshrl.u32 %v280_v22, %v117_v15  ;;  %v126_v26 = vshrl.u32 %v281_v25, %v117_v15  ;;  %v129_v29 = vshrl.u32 %v282_v28, %v117_v15 }
  0xe9   :  { %v132_v32 = vshrl.u32 %v283_v31, %v117_v15  ;;  %v118_v42 = vshrl.u32 %v278_v17, %v117_v15  ;;  %vm136_vm6 = vcmp.lt.s32.totalorder %v115_v16, 3  ;;  %vm135_vm7 = vcmp.lt.s32.totalorder %v115_v16, 2 }
  0xea   :  { %v121_v34 = vor.u32 %v120_v21, %v119_v18  ;;  %v124_v35 = vor.u32 %v123_v23, %v122_v20  ;;  %v127_v36 = vor.u32 %v126_v26, %v125_v24  ;;  %v130_v37 = vor.u32 %v129_v29, %v128_v27 }
  0xeb   :  { %v133_v38 = vor.u32 %v132_v32, %v131_v30 }
  0xec   :  { %v139_v39 = vsel %vm137_vm5, %v127_v36, 2102212464  ;;  %v142_v40 = vsel %vm134_vm4, %v121_v34, %v124_v35  ;;  %v146_v41 = vsel %vm134_vm4, %v124_v35, %v127_v36  ;;  %v143_v43 = vsel %vm137_vm5, %v130_v37, 920167782 }
  0xed   :  { %v147_v44 = vsel %vm137_vm5, %v133_v38, 1326507024  ;;  %v144_v45 = vsel %vm136_vm6, %v127_v36, %v143_v43  ;;  %v138_v48 = vsel %vm134_vm4, %v118_v42, %v121_v34  ;;  %v140_v49 = vsel %vm136_vm6, %v124_v35, %v139_v39 }
  0xee   :  { %v148_v46 = vsel %vm136_vm6, %v130_v37, %v147_v44  ;;  %v145_v50 = vsel %vm135_vm7, %v142_v40, %v144_v45  ;;  %v141_v56 = vsel %vm135_vm7, %v138_v48, %v140_v49 }
  0xef   :  { %v149_v51 = vsel %vm135_vm7, %v146_v41, %v148_v46  ;;  %v323_v54 = vmul.u32.u64.low %v150_v47, %v145_v50  ;;  %v324_v55 = vmul.u32.u64.high %v150_v47, %v145_v50, %v323_v54  ;;  %v157_v58 = vmul.u32 %v150_v47, %v141_v56 }
  0xf0   :  { %v320_v52 = vmul.u32.u64.low %v150_v47, %v149_v51  ;;  %v321_v53 = vmul.u32.u64.high %v150_v47, %v149_v51, %v320_v52 }
  0xf1   :  { %v160_v57 = vadd.s32 1, %v324_v55 }
  0xf2   :  { %vm159_vm8 = vc.u32 %v321_v53, %v323_v54  ;;  %v158_v7 = vadd.s32 %v323_v54, %v321_v53 }
  0xf3   :  { %v161_v59 = vsel %vm159_vm8, %v160_v57, %v324_v55 }
  0xf4   :  { %v162_v60 = vadd.s32 %v161_v59, %v157_v58 }
  0xf6   :  { %v163_v61 = vadd.s32 536870912, %v162_v60 }
  0xf8   :  { %v164_v62 = vshrl.u32 %v163_v61, 30 }
  0xfa   :  { %v165_v63 = vshll.u32 %v164_v62, 30  ;;  %v188_v20 = vsub.s32 4, %v164_v62 }
  0xfc   :  { %v166_v0 = vsub.s32 %v162_v60, %v165_v63  ;;  %v189_v23 = vsel %vm104_vm10, %v188_v20, %v164_v62 }
  0xfd   :  { %v191_v25 = vsel %vm103_vm11, 0, %v189_v23 }
  0xfe   :  { %v168_v1 = vsub.s32 0, %v166_v0  ;;  %v195_v26 = vadd.s32 3, %v191_v25 }
 0x100   :  { %v225_v2 = vmin.u32 %v168_v1, %v166_v0  ;;  %v196_v27 = vand.u32 3, %v195_v26 }
 0x102   :  { %v170_v3 = vclz %v225_v2  ;;  %vm201_vm12 = vcmp.eq.s32.totalorder %v196_v27, 2  ;;  %vm198_vm13 = vcmp.eq.s32.totalorder %v196_v27, 0  ;;  %vm197_vm14 = vcmp.lt.s32.totalorder %v196_v27, 2 }
 0x104   :  { %v226_v4 = vadd.s32 4294967294, %v170_v3 }
 0x106   :  { %vm227_vm9 = vcmp.lt.s32.totalorder %v226_v4, 0 }
 0x107   :  { %v173_v6 = vsel %vm227_vm9, 0, %v226_v4 }
 0x108   :  { %v174_v8 = vsub.s32 32, %v173_v6  ;;  %v178_v9 = vsub.s32 4294967266, %v173_v6  ;;  %v175_v10 = vshll.u32 %v166_v0, %v173_v6 }
 0x10a   :  { %v176_v12 = vshrl.u32 %v158_v7, %v174_v8  ;;  %v179_v13 = vadd.s32 127, %v178_v9 }
 0x10c   :  { %v177_v14 = vor.u32 %v176_v12, %v175_v10  ;;  %v180_v15 = vshll.u32 %v179_v13, 23 }
 0x10e   :  { %v181_v16 = vor.u32 4788187, %v180_v15  ;;  %v184_v18 = vcvt.s32.f32 %v177_v14 }
 0x110   :  { %v182_v17 = vand.u32 2147483647, %v181_v16 }
 0x112   :  { %v185_v19 = vmul.f32 %v184_v18, %v182_v17 }
 0x114   :  { %v186_v21 = vxor.u32 2147483648, %v185_v19 }
 0x116   :  { %v187_v22 = vsel %vm104_vm10, %v186_v21, %v185_v19 }
 0x117   :  { %v190_v24 = vsel %vm103_vm11, %v314_v5, %v187_v22 }
 0x118   :  { %248 = vcosq.f32 %v190_v24 }
 0x119   :  { %250 = vsinq.f32 %v190_v24 }
 0x122   :  { %v249_v28 = vpop.eup %248 }
 0x123   :  { %v251_v29 = vpop.eup %250  ;;  %v202_v30 = vxor.u32 2147483648, %v249_v28 }
 0x124   :  { %v199_v31 = vxor.u32 2147483648, %v251_v29 }
 0x125   :  { %v203_v32 = vsel %vm201_vm12, %v202_v30, %v251_v29 }
 0x126   :  { %v200_v33 = vsel %vm198_vm13, %v249_v28, %v199_v31 }
 0x127   :  { %v204_v11 = vsel %vm197_vm14, %v200_v33, %v203_v32 }
 0x128   :  { %v205_v34 = vsel %vm194_vm15, nan, %v204_v11 }
 0x129   :  { %206 = vst [vmem:[#allocation2] sm:$0xff] %v205_v34 }
 0x12a   :  { %263 = shalt.err (!%p260_p4)
}
 0x12b   :  { %s264_s20 = scalar_lea.hbm %s350_s3, 128 }
 0x12c   :  { %p265_p5 = scmp.ne.s32.totalorder %s350_s3, %s264_s20  ;;  %p268_p6 = scmp.lt.u32.totalorder %s264_s20, %s350_s3 }
 0x12e   :  { %p270_p7 = pnand %p268_p6, %p265_p5 }
 0x130   :  { %273 = shalt.err (!%p270_p7)
}
 0x131   :  { %216 = dma.vmem_to_hbm [thread:$0]  %s214_s1, 128, %s350_s3, [#allocation3]  }
 0x132   :  { %274 = dma.done.wait [#allocation3], 128  }
 0x133   :  { %275 = vsyncadd [#allocation3], 4294967168 }
 0x134   :  { %220 = vsyncpa [#allocation3], 1 }

</bundles_post_ra>
